<compile_context>
chip_gen: v7x
topology: tpu7x:2x2x1
jax: 0.10.0
libtpu: 0.0.40
codegen_flags: <defaults>
</compile_context>

<pallas_src>
import functools

import jax
import jax.numpy as jnp
from jax import lax
from jax.experimental import pallas as pl
from jax.experimental.pallas import tpu as pltpu

STATE_DIM = 4
ACTION_DIM = 2
HIDDEN_DIM = 256
OUT_WIDTH = 8              # narrow lane-dense-ish output: mean | std | zero padding
LOG_STD_MIN = -20.0
LOG_STD_MAX = 2.0


def _round_up(x, m):
    return (x + m - 1) // m * m


def actor_kernel(state_ref,
                 w1_ref, b1_ref,
                 w2_ref, b2_ref,
                 wh_ref, bh_ref,
                 out_ref):
    x = state_ref[...]                                             # (TB, 4) f32
    tb = x.shape[0]

    # ---- fc1 + relu on the VPU (K=4 is a terrible MXU shape; 4 broadcast MACs
    #      in f32 keep full precision and stay off the matmul critical path).
    w1 = w1_ref[...]                                               # (4, HIDDEN) f32
    h1 = jnp.broadcast_to(b1_ref[...], (tb, HIDDEN_DIM))
    for k in range(STATE_DIM):                                     # unrolled, 4 MACs
        h1 = h1 + x[:, k:k + 1] * w1[k:k + 1, :]
    h1 = jnp.maximum(h1, 0.0)                                      # (TB, HIDDEN) f32

    # ---- fc2 + relu: bf16 MXU operands, f32 accumulate, f32 elementwise.
    h2 = jnp.dot(h1.astype(jnp.bfloat16), w2_ref[...],
                 preferred_element_type=jnp.float32) + b2_ref[...]
    h2 = jnp.maximum(h2, 0.0)                                      # (TB, HIDDEN) f32

    # ---- fused heads: one (HIDDEN, 8) matmul; lanes [0,A)=mean, [A,2A)=log_std.
    heads = jnp.dot(h2.astype(jnp.bfloat16), wh_ref[...],
                    preferred_element_type=jnp.float32) + bh_ref[...]   # (TB, 8) f32

    # ---- narrow epilogue: clamp+exp only on the 8-lane block, zero the padding.
    std_all = jnp.exp(jnp.clip(heads, LOG_STD_MIN, LOG_STD_MAX))
    col = lax.broadcasted_iota(jnp.int32, heads.shape, 1)
    out = jnp.where(col < ACTION_DIM, heads,
                    jnp.where(col < 2 * ACTION_DIM, std_all, 0.0))
    out_ref[...] = out.astype(out_ref.dtype)


def pack_params(p):
    """One-time prep: fuse the two heads into one lane-padded weight and pre-cast
    the MXU operands to bf16.  Call ONCE (e.g. right after init / after each
    optimizer step), then reuse the result for every forward call."""
    wh = jnp.concatenate([p["wm"], p["ws"]], axis=1)               # (HIDDEN, 2*A)
    bh = jnp.concatenate([p["bm"], p["bs"]], axis=1)               # (1, 2*A)
    wh = jnp.pad(wh, ((0, 0), (0, OUT_WIDTH - 2 * ACTION_DIM)))
    bh = jnp.pad(bh, ((0, 0), (0, OUT_WIDTH - 2 * ACTION_DIM)))
    return dict(
        w1=p["w1"].astype(jnp.float32),
        b1=p["b1"].astype(jnp.float32),
        w2=p["w2"].astype(jnp.bfloat16),     # halves weight bytes + native-bf16 MXU
        b2=p["b2"].astype(jnp.float32),
        wh=wh.astype(jnp.bfloat16),
        bh=bh.astype(jnp.float32),
    )


@functools.partial(jax.jit, static_argnames=("tb",))
def actor_forward(state, packed, *, tb=1024):
    """state: (B, STATE_DIM) f32.  packed: output of pack_params().  Returns (mean, std)."""
    B = state.shape[0]

    # Batch tiling: multiples of 8 (sublane).  On v7x, guarantee >= 2 grid steps
    # whenever the batch allows so dimension_semantics=("parallel",) can use both TCs.
    B8 = _round_up(max(B, 8), 8)
    tbx = min(_round_up(tb, 8), B8)
    if B8 // tbx < 2 and B8 >= 16:
        tbx = _round_up((B8 + 1) // 2, 8)
    B_pad = _round_up(B8, tbx)
    if B_pad != B:
        state = jnp.pad(state, ((0, B_pad - B), (0, 0)))
    grid = (B_pad // tbx,)

    const = lambda i: (0, 0)     # weights/biases: resident in VMEM across the grid
    in_specs = [
        pl.BlockSpec((tbx, STATE_DIM), lambda i: (i, 0)),          # state tile
        pl.BlockSpec((STATE_DIM, HIDDEN_DIM), const),              # w1 (f32)
        pl.BlockSpec((1, HIDDEN_DIM), const),                      # b1
        pl.BlockSpec((HIDDEN_DIM, HIDDEN_DIM), const),             # w2 (bf16)
        pl.BlockSpec((1, HIDDEN_DIM), const),                      # b2
        pl.BlockSpec((HIDDEN_DIM, OUT_WIDTH), const),              # wh (bf16, fused heads)
        pl.BlockSpec((1, OUT_WIDTH), const),                       # bh
    ]
    out_spec = pl.BlockSpec((tbx, OUT_WIDTH), lambda i: (i, 0))

    flops = 2 * B_pad * (STATE_DIM * HIDDEN_DIM
                         + HIDDEN_DIM * HIDDEN_DIM
                         + HIDDEN_DIM * OUT_WIDTH)
    bytes_accessed = (B_pad * STATE_DIM * 4
                      + STATE_DIM * HIDDEN_DIM * 4 + HIDDEN_DIM * 4
                      + HIDDEN_DIM * HIDDEN_DIM * 2 + HIDDEN_DIM * 4
                      + HIDDEN_DIM * OUT_WIDTH * 2 + OUT_WIDTH * 4
                      + B_pad * OUT_WIDTH * 4)

    out = pl.pallas_call(
        actor_kernel,
        out_shape=jax.ShapeDtypeStruct((B_pad, OUT_WIDTH), jnp.float32),
        grid=grid,
        in_specs=in_specs,
        out_specs=out_spec,
        compiler_params=pltpu.CompilerParams(
            dimension_semantics=("parallel",)),        # v7x: 2 TCs split batch tiles
        cost_estimate=pl.CostEstimate(
            flops=flops,
            transcendentals=B_pad * OUT_WIDTH,
            bytes_accessed=bytes_accessed),
    )(state,
      packed["w1"], packed["b1"],
      packed["w2"], packed["b2"],
      packed["wh"], packed["bh"])

    mean = out[:B, :ACTION_DIM]
    std = out[:B, ACTION_DIM:2 * ACTION_DIM]
    return mean, std


def init_params(key):
    """Deterministic PyTorch-style init: U(-1/sqrt(fan_in), 1/sqrt(fan_in)).
    Weights stored transposed vs. PyTorch, i.e. (in_dim, out_dim); biases (1, out_dim)."""
    ks = jax.random.split(key, 8)

    def lin(kw, kb, fan_in, fan_out):
        bound = 1.0 / jnp.sqrt(jnp.float32(fan_in))
        w = jax.random.uniform(kw, (fan_in, fan_out), jnp.float32, -bound, bound)
        b = jax.random.uniform(kb, (1, fan_out), jnp.float32, -bound, bound)
        return w, b

    w1, b1 = lin(ks[0], ks[1], STATE_DIM, HIDDEN_DIM)
    w2, b2 = lin(ks[2], ks[3], HIDDEN_DIM, HIDDEN_DIM)
    wm, bm = lin(ks[4], ks[5], HIDDEN_DIM, ACTION_DIM)
    ws, bs = lin(ks[6], ks[7], HIDDEN_DIM, ACTION_DIM)
    return dict(w1=w1, b1=b1, w2=w2, b2=b2, wm=wm, bm=bm, ws=ws, bs=bs)


def actor_forward_ref_f32(state, p):
    """Pure-f32 reference (exact PyTorch semantics)."""
    hp = lax.Precision.HIGHEST
    h1 = jnp.maximum(jnp.dot(state, p["w1"], precision=hp) + p["b1"], 0.0)
    h2 = jnp.maximum(jnp.dot(h1, p["w2"], precision=hp) + p["b2"], 0.0)
    mean = jnp.dot(h2, p["wm"], precision=hp) + p["bm"]
    log_std = jnp.clip(jnp.dot(h2, p["ws"], precision=hp) + p["bs"],
                       LOG_STD_MIN, LOG_STD_MAX)
    return mean, jnp.exp(log_std)


def actor_forward_ref_bf16(state, p):
    """Reference mirroring the kernel's precision: f32 fc1, bf16-operand MXU
    matmuls with f32 accumulation for fc2 and the heads."""
    hp = lax.Precision.HIGHEST
    bf = jnp.bfloat16
    h1 = jnp.maximum(jnp.dot(state, p["w1"], precision=hp) + p["b1"], 0.0)
    h2 = jnp.maximum(jnp.dot(h1.astype(bf), p["w2"].astype(bf),
                             preferred_element_type=jnp.float32) + p["b2"], 0.0)
    mean = jnp.dot(h2.astype(bf), p["wm"].astype(bf),
                   preferred_element_type=jnp.float32) + p["bm"]
    log_std = jnp.clip(jnp.dot(h2.astype(bf), p["ws"].astype(bf),
                               preferred_element_type=jnp.float32) + p["bs"],
                       LOG_STD_MIN, LOG_STD_MAX)
    return mean, jnp.exp(log_std)


if __name__ == "__main__":
    key = jax.random.PRNGKey(0)
    k_params, k_state = jax.random.split(key)

    params = init_params(k_params)
    packed = pack_params(params)       # one-time packing, reused every call
    packed = jax.block_until_ready(packed)

    B = 8
    state = jax.random.normal(k_state, (B, STATE_DIM), jnp.float32)

    mean, std = actor_forward(state, packed)
    mean, std = jax.block_until_ready((mean, std))

    assert mean.shape == (B, ACTION_DIM) and std.shape == (B, ACTION_DIM)

    # Primary check: against a reference using the same bf16-operand precision.
    mean_bf, std_bf = actor_forward_ref_bf16(state, params)
    assert jnp.allclose(mean, mean_bf, atol=2e-3, rtol=2e-3)
    assert jnp.allclose(std, std_bf, atol=2e-3, rtol=2e-3)

    # Semantic sanity check vs. the pure-f32 module (looser tolerance for bf16 MXU ops).
    mean_f32, std_f32 = actor_forward_ref_f32(state, params)
    assert jnp.allclose(mean, mean_f32, atol=5e-2, rtol=5e-2)
    assert jnp.allclose(std, std_f32, atol=5e-2, rtol=5e-2)

    print("KERNEL_OK")
</pallas_src>

<mosaic_0001>
module attributes {stable_mosaic.version = 11 : i64} {
  func.func @actor_kernel(%arg0: i32, %arg1: memref<8x4xf32, #tpu.memory_space<vmem>>, %arg2: memref<4x256xf32, #tpu.memory_space<vmem>>, %arg3: memref<1x256xf32, #tpu.memory_space<vmem>>, %arg4: memref<256x256xbf16, #tpu.memory_space<vmem>>, %arg5: memref<1x256xf32, #tpu.memory_space<vmem>>, %arg6: memref<256x8xbf16, #tpu.memory_space<vmem>>, %arg7: memref<1x8xf32, #tpu.memory_space<vmem>>, %arg8: memref<8x8xf32, #tpu.memory_space<vmem>>) attributes {dimension_semantics = [#tpu.dimension_semantics<parallel>], iteration_bounds = array<i64: 1>, scalar_prefetch = 0 : i64, scratch_operands = 0 : i64, tpu.core_type = #tpu.core_type<tc>, window_params = [{transform_indices = @transform_0, window_bounds = array<i64: 8, 4>}, {pipeline_mode = #tpu.pipeline_mode<synchronous>, transform_indices = @transform_1, window_bounds = array<i64: 4, 256>}, {pipeline_mode = #tpu.pipeline_mode<synchronous>, transform_indices = @transform_2, window_bounds = array<i64: 1, 256>}, {pipeline_mode = #tpu.pipeline_mode<synchronous>, transform_indices = @transform_3, window_bounds = array<i64: 256, 256>}, {pipeline_mode = #tpu.pipeline_mode<synchronous>, transform_indices = @transform_4, window_bounds = array<i64: 1, 256>}, {pipeline_mode = #tpu.pipeline_mode<synchronous>, transform_indices = @transform_5, window_bounds = array<i64: 256, 8>}, {pipeline_mode = #tpu.pipeline_mode<synchronous>, transform_indices = @transform_6, window_bounds = array<i64: 1, 8>}, {transform_indices = @transform_7, window_bounds = array<i64: 8, 8>}]} {
    %c0 = arith.constant 0 : index
    %c0_0 = arith.constant 0 : index
    %0 = vector.load %arg1[%c0, %c0_0] : memref<8x4xf32, #tpu.memory_space<vmem>>, vector<8x4xf32>
    %c0_1 = arith.constant 0 : index
    %c0_2 = arith.constant 0 : index
    %1 = vector.load %arg2[%c0_1, %c0_2] : memref<4x256xf32, #tpu.memory_space<vmem>>, vector<4x256xf32>
    %c0_3 = arith.constant 0 : index
    %c0_4 = arith.constant 0 : index
    %2 = vector.load %arg3[%c0_3, %c0_4] : memref<1x256xf32, #tpu.memory_space<vmem>>, vector<1x256xf32>
    %3 = vector.shape_cast %2 : vector<1x256xf32> to vector<1x256xf32>
    %4 = vector.broadcast %3 : vector<1x256xf32> to vector<8x256xf32>
    %5 = vector.extract_strided_slice %0 {offsets = [0, 0], sizes = [8, 1], strides = [1, 1]} : vector<8x4xf32> to vector<8x1xf32>
    %6 = vector.extract_strided_slice %1 {offsets = [0, 0], sizes = [1, 256], strides = [1, 1]} : vector<4x256xf32> to vector<1x256xf32>
    %7 = vector.broadcast %5 : vector<8x1xf32> to vector<8x256xf32>
    %8 = vector.broadcast %6 : vector<1x256xf32> to vector<8x256xf32>
    %9 = arith.mulf %7, %8 : vector<8x256xf32>
    %10 = arith.addf %4, %9 : vector<8x256xf32>
    %11 = vector.extract_strided_slice %0 {offsets = [0, 1], sizes = [8, 1], strides = [1, 1]} : vector<8x4xf32> to vector<8x1xf32>
    %12 = vector.extract_strided_slice %1 {offsets = [1, 0], sizes = [1, 256], strides = [1, 1]} : vector<4x256xf32> to vector<1x256xf32>
    %13 = vector.broadcast %11 : vector<8x1xf32> to vector<8x256xf32>
    %14 = vector.broadcast %12 : vector<1x256xf32> to vector<8x256xf32>
    %15 = arith.mulf %13, %14 : vector<8x256xf32>
    %16 = arith.addf %10, %15 : vector<8x256xf32>
    %17 = vector.extract_strided_slice %0 {offsets = [0, 2], sizes = [8, 1], strides = [1, 1]} : vector<8x4xf32> to vector<8x1xf32>
    %18 = vector.extract_strided_slice %1 {offsets = [2, 0], sizes = [1, 256], strides = [1, 1]} : vector<4x256xf32> to vector<1x256xf32>
    %19 = vector.broadcast %17 : vector<8x1xf32> to vector<8x256xf32>
    %20 = vector.broadcast %18 : vector<1x256xf32> to vector<8x256xf32>
    %21 = arith.mulf %19, %20 : vector<8x256xf32>
    %22 = arith.addf %16, %21 : vector<8x256xf32>
    %23 = vector.extract_strided_slice %0 {offsets = [0, 3], sizes = [8, 1], strides = [1, 1]} : vector<8x4xf32> to vector<8x1xf32>
    %24 = vector.extract_strided_slice %1 {offsets = [3, 0], sizes = [1, 256], strides = [1, 1]} : vector<4x256xf32> to vector<1x256xf32>
    %25 = vector.broadcast %23 : vector<8x1xf32> to vector<8x256xf32>
    %26 = vector.broadcast %24 : vector<1x256xf32> to vector<8x256xf32>
    %27 = arith.mulf %25, %26 : vector<8x256xf32>
    %28 = arith.addf %22, %27 : vector<8x256xf32>
    %cst = arith.constant 0.000000e+00 : f32
    %29 = vector.broadcast %cst : f32 to vector<8x256xf32>
    %30 = arith.maximumf %28, %29 : vector<8x256xf32>
    %31 = arith.truncf %30 : vector<8x256xf32> to vector<8x256xbf16>
    %c0_5 = arith.constant 0 : index
    %c0_6 = arith.constant 0 : index
    %32 = vector.load %arg4[%c0_5, %c0_6] : memref<256x256xbf16, #tpu.memory_space<vmem>>, vector<256x256xbf16>
    %cst_7 = arith.constant dense<0.000000e+00> : vector<8x256xf32>
    %33 = tpu.matmul %31, %32, %cst_7 {dimension_numbers = #tpu.dot_dimension_numbers<[1], [0], [0], [1], [0, 0, 1, 1], [], []>} : vector<8x256xbf16>, vector<256x256xbf16>, vector<8x256xf32> -> vector<8x256xf32>
    %c0_8 = arith.constant 0 : index
    %c0_9 = arith.constant 0 : index
    %34 = vector.load %arg5[%c0_8, %c0_9] : memref<1x256xf32, #tpu.memory_space<vmem>>, vector<1x256xf32>
    %35 = vector.broadcast %34 : vector<1x256xf32> to vector<8x256xf32>
    %36 = arith.addf %33, %35 : vector<8x256xf32>
    %cst_10 = arith.constant 0.000000e+00 : f32
    %37 = vector.broadcast %cst_10 : f32 to vector<8x256xf32>
    %38 = arith.maximumf %36, %37 : vector<8x256xf32>
    %39 = arith.truncf %38 : vector<8x256xf32> to vector<8x256xbf16>
    %c0_11 = arith.constant 0 : index
    %c0_12 = arith.constant 0 : index
    %40 = vector.load %arg6[%c0_11, %c0_12] : memref<256x8xbf16, #tpu.memory_space<vmem>>, vector<256x8xbf16>
    %cst_13 = arith.constant dense<0.000000e+00> : vector<8x8xf32>
    %41 = tpu.matmul %39, %40, %cst_13 {dimension_numbers = #tpu.dot_dimension_numbers<[1], [0], [0], [1], [0, 0, 1, 1], [], []>} : vector<8x256xbf16>, vector<256x8xbf16>, vector<8x8xf32> -> vector<8x8xf32>
    %c0_14 = arith.constant 0 : index
    %c0_15 = arith.constant 0 : index
    %42 = vector.load %arg7[%c0_14, %c0_15] : memref<1x8xf32, #tpu.memory_space<vmem>>, vector<1x8xf32>
    %43 = vector.broadcast %42 : vector<1x8xf32> to vector<8x8xf32>
    %44 = arith.addf %41, %43 : vector<8x8xf32>
    %cst_16 = arith.constant -2.000000e+01 : f32
    %cst_17 = arith.constant 2.000000e+00 : f32
    %45 = vector.broadcast %cst_16 : f32 to vector<8x8xf32>
    %46 = arith.maximumf %45, %44 : vector<8x8xf32>
    %47 = vector.broadcast %cst_17 : f32 to vector<8x8xf32>
    %48 = arith.minimumf %47, %46 : vector<8x8xf32>
    %49 = math.exp %48 : vector<8x8xf32>
    %50 = tpu.iota {dimensions = array<i32: 1>} : vector<8x8xi32>
    %c2_i32 = arith.constant 2 : i32
    %51 = vector.broadcast %c2_i32 : i32 to vector<8x8xi32>
    %52 = arith.cmpi slt, %50, %51 : vector<8x8xi32>
    %c4_i32 = arith.constant 4 : i32
    %53 = vector.broadcast %c4_i32 : i32 to vector<8x8xi32>
    %54 = arith.cmpi slt, %50, %53 : vector<8x8xi32>
    %cst_18 = arith.constant 0.000000e+00 : f32
    %55 = vector.broadcast %cst_18 : f32 to vector<8x8xf32>
    %56 = arith.select %54, %49, %55 : vector<8x8xi1>, vector<8x8xf32>
    %57 = arith.select %52, %44, %56 : vector<8x8xi1>, vector<8x8xf32>
    %c0_19 = arith.constant 0 : index
    %c0_20 = arith.constant 0 : index
    %58 = vector.load %arg8[%c0_19, %c0_20] : memref<8x8xf32, #tpu.memory_space<vmem>>, vector<8x8xf32>
    tpu.vector_store %arg8[%c0_19, %c0_20], %57 {strides = array<i32>} : memref<8x8xf32, #tpu.memory_space<vmem>>, vector<8x8xf32>,
    return
  }
  func.func @transform_0(%arg0: i32) -> (i32, i32) {
    %c0_i32 = arith.constant 0 : i32
    %c0_i32_0 = arith.constant 0 : i32
    return %arg0, %c0_i32 : i32, i32
  }
  func.func @transform_1(%arg0: i32) -> (i32, i32) {
    %c0_i32 = arith.constant 0 : i32
    %c0_i32_0 = arith.constant 0 : i32
    %c0_i32_1 = arith.constant 0 : i32
    return %c0_i32, %c0_i32_0 : i32, i32
  }
  func.func @transform_2(%arg0: i32) -> (i32, i32) {
    %c0_i32 = arith.constant 0 : i32
    %c0_i32_0 = arith.constant 0 : i32
    %c0_i32_1 = arith.constant 0 : i32
    return %c0_i32, %c0_i32_0 : i32, i32
  }
  func.func @transform_3(%arg0: i32) -> (i32, i32) {
    %c0_i32 = arith.constant 0 : i32
    %c0_i32_0 = arith.constant 0 : i32
    %c0_i32_1 = arith.constant 0 : i32
    return %c0_i32, %c0_i32_0 : i32, i32
  }
  func.func @transform_4(%arg0: i32) -> (i32, i32) {
    %c0_i32 = arith.constant 0 : i32
    %c0_i32_0 = arith.constant 0 : i32
    %c0_i32_1 = arith.constant 0 : i32
    return %c0_i32, %c0_i32_0 : i32, i32
  }
  func.func @transform_5(%arg0: i32) -> (i32, i32) {
    %c0_i32 = arith.constant 0 : i32
    %c0_i32_0 = arith.constant 0 : i32
    %c0_i32_1 = arith.constant 0 : i32
    return %c0_i32, %c0_i32_0 : i32, i32
  }
  func.func @transform_6(%arg0: i32) -> (i32, i32) {
    %c0_i32 = arith.constant 0 : i32
    %c0_i32_0 = arith.constant 0 : i32
    %c0_i32_1 = arith.constant 0 : i32
    return %c0_i32, %c0_i32_0 : i32, i32
  }
  func.func @transform_7(%arg0: i32) -> (i32, i32) {
    %c0_i32 = arith.constant 0 : i32
    %c0_i32_0 = arith.constant 0 : i32
    return %arg0, %c0_i32 : i32, i32
  }
}

</mosaic_0001>

<bundles_post_ra>
// kernel: actor_forward.1
= control target key start
LH: loop header
LB: loop body
LE: loop exit
PB: predicated region body
PF: predicated region fallthrough
CT: control target
= control target key end

     0   :  { %12 = vsyncpa [#allocation3], 0  ;;  %s779_s24 = smov [#allocation2]   ;;  %s920_s0 = inlined_call_operand.vmem [shape: f32[8,4], index: 0, kind: input, shape index: {}]   ;;  %s921_s1 = inlined_call_operand.vmem [shape: f32[4,256], index: 1, kind: input, shape index: {}]   ;;  %s922_s2 = inlined_call_operand.vmem [shape: f32[1,256], index: 2, kind: input, shape index: {}]   ;;  %s923_s3 = inlined_call_operand.hbm [shape: bf16[256,256], index: 3, kind: input, shape index: {}]   ;;  %s924_s4 = inlined_call_operand.vmem [shape: f32[1,256], index: 4, kind: input, shape index: {}]   ;;  %s925_s5 = inlined_call_operand.vmem [shape: bf16[256,8], index: 5, kind: input, shape index: {}]   ;;  %s926_s6 = inlined_call_operand.vmem [shape: f32[1,8], index: 6, kind: input, shape index: {}]   ;;  %s927_s7 = inlined_call_operand.vmem [shape: f32[8,8], index: 7, kind: output, shape index: {}]  }
   0x1   :  { %s24_s25 = sshll.u32 %s779_s24, 4  ;;  %s755_s28 = scalar_lea.hbm %s923_s3, 4096  ;;  %s25_s25 = int_to_ptr.vmem [resolvable:$true] %s24_s25 }
   0x2   :  { %p756_p0 = scmp.ne.s32.totalorder %s923_s3, %s755_s28  ;;  %p759_p1 = scmp.lt.u32.totalorder %s755_s28, %s923_s3 }
   0x4   :  { %p761_p2 = pnand %p759_p1, %p756_p0 }
   0x6   :  { %764 = shalt.err (!%p761_p2)
}
   0x7   :  { %s765_s10 = scalar_lea.vmem %s25_s25, 4096  ;;  %p770_p4 = scmp.lt.s32.totalorder %s25_s25, %s25_s25 }
   0x8   :  { %p766_p3 = scmp.ne.s32.totalorder %s25_s25, %s765_s10  ;;  %p771_p5 = scmp.lt.s32.totalorder %s765_s10, %s765_s10 }
   0xa   :  { %p772_p6 = por %p771_p5, %p770_p4 }
   0xc   :  { %p773_p7 = pnand %p772_p6, %p766_p3 }
   0xe   :  { %776 = shalt.err (!%p773_p7)
}
   0xf   :  { %s780_s11 = smov 128   ;;  %s781_s12 = smov 8  }
  0x10   :  { %30 = dma.hbm_to_vmem [thread:$0]  %s923_s3, 4096, %s25_s25, [#allocation3], %s780_s11, %s780_s11, %s781_s12  }
  0x11   :  { %777 = dma.done.wait [#allocation3], 4096  }
  0x12   :  { %778 = vsyncadd [#allocation3], 4294963200  ;;  %v782_v0 = vmov 0   ;;  %v783_v1 = vmov 2   ;;  %v41_v2 = vld [vmem:[%s920_s0] sm:$0xff]  ;;  %v784_v7 = vmov 1   ;;  %v45_v49 = vlaneseq }
  0x13   :  { %684 = vset.pattern.permute.xlu0 %v782_v0  ;;  %686 = vset.pattern.permute.xlu1 %v783_v1  ;;  %v689_v3 = vld [vmem:[#allocation2 + $0x4] ss:$8 sps:$4 sm:$0xff]   ;;  %v691_v4 = vld [vmem:[#allocation2] ss:$8 sps:$4 sm:$0xff]   ;;  %v692_v5 = vld [vmem:[#allocation2 + $0x14] ss:$8 sps:$4 sm:$0xff]  }
  0x14   :  { %57 = vperm.xlu0 %684, %v41_v2   ;;  %110 = vperm.xlu1 %686, %v41_v2   ;;  %v694_v6 = vld [vmem:[#allocation2 + $0x10] ss:$8 sps:$4 sm:$0xff]   ;;  %v785_v8 = vmov 3   ;;  %v695_v9 = vld [vmem:[#allocation2 + $0x24] ss:$8 sps:$4 sm:$0xff]   ;;  %v46_v50 = vshrl.u32 %v45_v49, 7 }
  0x15   :  { %369 = vmatprep.subr.bf16.mxu0 %v689_v3  ;;  %v697_v10 = vld [vmem:[#allocation2 + $0x20] ss:$8 sps:$4 sm:$0xff]   ;;  %v698_v11 = vld [vmem:[#allocation2 + $0x34] ss:$8 sps:$4 sm:$0xff]   ;;  %v700_v12 = vld [vmem:[#allocation2 + $0x30] ss:$8 sps:$4 sm:$0xff]  }
  0x16   :  { %370 = vmatpush1.bf16.msra.mxu0 %v691_v4  ;;  %v701_v13 = vld [vmem:[#allocation2 + $0x44] ss:$8 sps:$4 sm:$0xff]   ;;  %v703_v14 = vld [vmem:[#allocation2 + $0x40] ss:$8 sps:$4 sm:$0xff]   ;;  %v704_v15 = vld [vmem:[#allocation2 + $0x54] ss:$8 sps:$4 sm:$0xff]  }
  0x17   :  { %371 = vmatprep.subr.bf16.mxu0 %v692_v5  ;;  %v706_v16 = vld [vmem:[#allocation2 + $0x50] ss:$8 sps:$4 sm:$0xff]   ;;  %v707_v17 = vld [vmem:[#allocation2 + $0x64] ss:$8 sps:$4 sm:$0xff]   ;;  %v709_v18 = vld [vmem:[#allocation2 + $0x60] ss:$8 sps:$4 sm:$0xff]  }
  0x18   :  { %685 = vset.pattern.permute.xlu0 %v784_v7  ;;  %687 = vset.pattern.permute.xlu1 %v785_v8  ;;  %v710_v19 = vld [vmem:[#allocation2 + $0x74] ss:$8 sps:$4 sm:$0xff]   ;;  %v737_v20 = vld [vmem:[%s925_s5 + $0x40] sm:$0xff]   ;;  %v739_v22 = vld [vmem:[%s925_s5 + $0x48] sm:$0xff]   ;;  %v878_v51 = vsub.s32 0, %v46_v50  ;;  %v67_v52 = vsub.s32 4, %v46_v50 }
  0x19   :  { %84 = vperm.xlu0 %685, %v41_v2   ;;  %136 = vperm.xlu1 %687, %v41_v2   ;;  %v738_v21 = vld [vmem:[%s925_s5] sm:$0xff]   ;;  %v740_v23 = vld [vmem:[%s925_s5 + $0x8] sm:$0xff]   ;;  %v741_v24 = vld [vmem:[%s925_s5 + $0x50] sm:$0xff]   ;;  %v883_v54 = vsub.s32 1, %v46_v50  ;;  %v93_v57 = vsub.s32 5, %v46_v50  ;;  %v115_v58 = vsub.s32 2, %v46_v50 }
  0x1a   :  { %372 = vmatpush1.bf16.msra.mxu0 %v694_v6  ;;  %655 = vmatprep.subr.bf16.mxu1 %v737_v20  ;;  %v712_v25 = vld [vmem:[#allocation2 + $0x70] ss:$8 sps:$4 sm:$0xff]   ;;  %v713_v26 = vld [vmem:[#allocation2 + $0x84] ss:$8 sps:$4 sm:$0xff]   ;;  %v715_v29 = vld [vmem:[#allocation2 + $0x80] ss:$8 sps:$4 sm:$0xff]  }
  0x1b   :  { %373 = vmatprep.subr.bf16.mxu0 %v695_v9  ;;  %656 = vmatpush3.bf16.msra.mxu1 %v738_v21  ;;  %v742_v27 = vld [vmem:[%s925_s5 + $0x10] sm:$0xff]   ;;  %v743_v28 = vld [vmem:[%s925_s5 + $0x58] sm:$0xff]   ;;  %v745_v33 = vld [vmem:[%s925_s5 + $0x60] sm:$0xff]   ;;  %v119_v59 = vsub.s32 6, %v46_v50  ;;  %v141_v60 = vsub.s32 3, %v46_v50  ;;  %v145_v61 = vsub.s32 7, %v46_v50 }
  0x1c   :  { %657 = vmatprep.subr.bf16.mxu1 %v739_v22  ;;  %v716_v30 = vld [vmem:[#allocation2 + $0x94] ss:$8 sps:$4 sm:$0xff]   ;;  %v718_v31 = vld [vmem:[#allocation2 + $0x90] ss:$8 sps:$4 sm:$0xff]   ;;  %v719_v34 = vld [vmem:[#allocation2 + $0xa4] ss:$8 sps:$4 sm:$0xff]  }
  0x1d   :  { %688 = vset.pattern.permute.xlu0 %v785_v8  ;;  %v744_v32 = vld [vmem:[%s925_s5 + $0x18] sm:$0xff]   ;;  %v746_v35 = vld [vmem:[%s925_s5 + $0x20] sm:$0xff]   ;;  %v747_v36 = vld [vmem:[%s925_s5 + $0x68] sm:$0xff]   ;;  %vm599_vm2 = vcmask 64512  }
  0x1e   :  { %374 = vmatpush1.bf16.msra.mxu0 %v697_v10  ;;  %v721_v37 = vld [vmem:[#allocation2 + $0xa0] ss:$8 sps:$4 sm:$0xff]   ;;  %v722_v38 = vld [vmem:[#allocation2 + $0xb4] ss:$8 sps:$4 sm:$0xff]   ;;  %v724_v40 = vld [vmem:[#allocation2 + $0xb0] ss:$8 sps:$4 sm:$0xff]  }
  0x1f   :  { %375 = vmatprep.subr.bf16.mxu0 %v698_v11  ;;  %658 = vmatpush3.bf16.msra.mxu1 %v740_v23  ;;  %v748_v39 = vld [vmem:[%s925_s5 + $0x28] sm:$0xff]   ;;  %v728_v43 = vld [vmem:[#allocation2 + $0xd4] ss:$8 sps:$4 sm:$0xff]   ;;  %v730_v44 = vld [vmem:[#allocation2 + $0xd0] ss:$8 sps:$4 sm:$0xff]  }
  0x20   :  { %659 = vmatprep.subr.bf16.mxu1 %v741_v24  ;;  %v725_v41 = vld [vmem:[#allocation2 + $0xc4] ss:$8 sps:$4 sm:$0xff]   ;;  %v727_v42 = vld [vmem:[#allocation2 + $0xc0] ss:$8 sps:$4 sm:$0xff]   ;;  %v734_v47 = vld [vmem:[#allocation2 + $0xf4] ss:$8 sps:$4 sm:$0xff]  }
  0x21   :  { %v731_v45 = vld [vmem:[#allocation2 + $0xe4] ss:$8 sps:$4 sm:$0xff]   ;;  %v733_v46 = vld [vmem:[#allocation2 + $0xe0] ss:$8 sps:$4 sm:$0xff]   ;;  %v736_v48 = vld [vmem:[#allocation2 + $0xf0] ss:$8 sps:$4 sm:$0xff]  }
  0x22   :  { %376 = vmatpush1.bf16.msra.mxu0 %v700_v12  ;;  %v42_v53 = vld [vmem:[%s921_s1] sm:$0xff] }
  0x23   :  { %377 = vmatprep.subr.bf16.mxu0 %v701_v13  ;;  %660 = vmatpush3.bf16.msra.mxu1 %v742_v27  ;;  %v64_v55 = vrot.slane %v42_v53, %v878_v51  ;;  %v68_v56 = vrot.slane %v42_v53, %v67_v52  ;;  %v43_v62 = vld [vmem:[%s922_s2] sm:$0x3]  ;;  %v90_v1 = vrot.slane %v42_v53, %v883_v54 }
  0x24   :  { %661 = vmatprep.subr.bf16.mxu1 %v743_v28  ;;  %v94_v2 = vrot.slane %v42_v53, %v93_v57  ;;  %v116_v3 = vrot.slane %v42_v53, %v115_v58  ;;  %v120_v4 = vrot.slane %v42_v53, %v119_v59  ;;  %v142_v7 = vrot.slane %v42_v53, %v141_v60 }
  0x25   :  { %v74_v63 = vrot.slane %v64_v55, %v878_v51  ;;  %v78_v0 = vrot.slane %v68_v56, %v878_v51  ;;  %v146_v8 = vrot.slane %v42_v53, %v145_v61  ;;  %v48_v9 = vrot.slane %v43_v62, %v878_v51 }
  0x26   :  { %378 = vmatpush1.bf16.msra.mxu0 %v703_v14  ;;  %v52_v10 = vrot.slane %v43_v62, %v883_v54  ;;  %v100_v13 = vrot.slane %v90_v1, %v883_v54  ;;  %v104_v14 = vrot.slane %v94_v2, %v883_v54 }
  0x27   :  { %379 = vmatprep.subr.bf16.mxu0 %v704_v15  ;;  %662 = vmatpush3.bf16.msra.mxu1 %v744_v32  ;;  %v126_v15 = vrot.slane %v116_v3, %v115_v58  ;;  %v594_v3 = vand.u32 127, %v45_v49 }
  0x28   :  { %663 = vmatprep.subr.bf16.mxu1 %v745_v33 }
  0x29   :  { %vm596_vm0 = vcmp.lt.s32.totalorder %v594_v3, 4  ;;  %vm595_vm1 = vcmp.lt.s32.totalorder %v594_v3, 2 }
  0x2a   :  { %380 = vmatpush1.bf16.msra.mxu0 %v706_v16  ;;  %v130_v16 = vrot.slane %v120_v4, %v115_v58 }
  0x2b   :  { %381 = vmatprep.subr.bf16.mxu0 %v707_v17  ;;  %664 = vmatpush3.bf16.msra.mxu1 %v746_v35  ;;  %v152_v17 = vrot.slane %v142_v7, %v141_v60 }
  0x2c   :  { %665 = vmatprep.subr.bf16.mxu1 %v747_v36 }
  0x2e   :  { %382 = vmatpush1.bf16.msra.mxu0 %v709_v18  ;;  %v156_v18 = vrot.slane %v146_v8, %v141_v60  ;;  %v638_v60 = vld [vmem:[%s926_s6] ss:$0 sm:$0xff] }
  0x2f   :  { %383 = vmatprep.subr.bf16.mxu0 %v710_v19  ;;  %666 = vmatpush3.bf16.msra.mxu1 %v748_v39  ;;  %v749_v39 = vld [vmem:[%s925_s5 + $0x70] sm:$0xff]  }
  0x30   :  { %667 = vmatprep.subr.bf16.mxu1 %v749_v39 }
  0x32   :  { %384 = vmatpush1.bf16.msra.mxu0 %v712_v25 }
  0x33   :  { %385 = vmatprep.subr.bf16.mxu0 %v713_v26 }
  0x36   :  { %386 = vmatpush1.bf16.msra.mxu0 %v715_v29 }
  0x37   :  { %387 = vmatprep.subr.bf16.mxu0 %v716_v30 }
  0x3a   :  { %388 = vmatpush1.bf16.msra.mxu0 %v718_v31 }
  0x3b   :  { %389 = vmatprep.subr.bf16.mxu0 %v719_v34 }
  0x3e   :  { %390 = vmatpush1.bf16.msra.mxu0 %v721_v37 }
  0x3f   :  { %391 = vmatprep.subr.bf16.mxu0 %v722_v38 }
  0x42   :  { %392 = vmatpush1.bf16.msra.mxu0 %v724_v40  ;;  %v750_v40 = vld [vmem:[%s925_s5 + $0x30] sm:$0xff]  }
  0x43   :  { %393 = vmatprep.subr.bf16.mxu0 %v725_v41  ;;  %668 = vmatpush3.bf16.msra.mxu1 %v750_v40  ;;  %v751_v41 = vld [vmem:[%s925_s5 + $0x78] sm:$0xff]  }
  0x44   :  { %669 = vmatprep.subr.bf16.mxu1 %v751_v41 }
  0x46   :  { %394 = vmatpush1.bf16.msra.mxu0 %v727_v42  ;;  %v752_v42 = vld [vmem:[%s925_s5 + $0x38] sm:$0xff]  }
  0x47   :  { %395 = vmatprep.subr.bf16.mxu0 %v728_v43  ;;  %670 = vmatpush3.bf16.msra.mxu1 %v752_v42  ;;  %v197_v43 = vld [vmem:[%s924_s4] sm:$0x3] }
  0x4a   :  { %396 = vmatpush1.bf16.msra.mxu0 %v730_v44  ;;  %v202_v44 = vrot.slane %v197_v43, %v878_v51 }
  0x4b   :  { %397 = vmatprep.subr.bf16.mxu0 %v731_v45  ;;  %v206_v45 = vrot.slane %v197_v43, %v883_v54 }
  0x4e   :  { %398 = vmatpush1.bf16.msra.mxu0 %v733_v46 }
  0x4f   :  { %399 = vmatprep.subr.bf16.mxu0 %v734_v47 }
  0x52   :  { %400 = vmatpush1.bf16.msra.mxu0 %v736_v48 }
  0x93   :  { %v58_v5 = vpop.permute.xlu0 %57  ;;  %v111_v6 = vpop.permute.xlu1 %110 }
  0x94   :  { %v79_v11 = vmul.f32 %v74_v63, %v58_v5  ;;  %v80_v12 = vmul.f32 %v78_v0, %v58_v5  ;;  %v131_v25 = vmul.f32 %v126_v15, %v111_v6  ;;  %v132_v26 = vmul.f32 %v130_v16, %v111_v6 }
  0x96   :  { %v81_v21 = vadd.f32 %v79_v11, %v48_v9  ;;  %v82_v22 = vadd.f32 %v80_v12, %v52_v10 }
  0x98   :  { %v85_v19 = vpop.permute.xlu0 %84  ;;  %v137_v20 = vpop.permute.xlu1 %136 }
  0x99   :  { %v105_v23 = vmul.f32 %v100_v13, %v85_v19  ;;  %v106_v24 = vmul.f32 %v104_v14, %v85_v19  ;;  %v157_v29 = vmul.f32 %v152_v17, %v137_v20  ;;  %v158_v30 = vmul.f32 %v156_v18, %v137_v20 }
  0x9b   :  { %v107_v27 = vadd.f32 %v105_v23, %v81_v21  ;;  %v108_v28 = vadd.f32 %v106_v24, %v82_v22 }
  0x9d   :  { %v133_v31 = vadd.f32 %v131_v25, %v107_v27  ;;  %v134_v32 = vadd.f32 %v132_v26, %v108_v28 }
  0x9f   :  { %v159_v33 = vadd.f32 %v157_v29, %v133_v31  ;;  %v160_v34 = vadd.f32 %v158_v30, %v134_v32 }
  0xa1   :  { %v161_v35 = vmax.f32 %v159_v33, 0.0  ;;  %v162_v36 = vmax.f32 %v160_v34, 0.0 }
  0xa3   :  { %v163_v37 = vpack.c.bf16 %v161_v35, %v161_v35  ;;  %v164_v38 = vpack.c.bf16 %v162_v36, %v162_v36 }
  0xa5   :  { %401 = vmatprep.mubr.bf16.mxu0 %v164_v38 }
  0xa6   :  { %402 = vmatmul.mubr.bf16.vlgmr.msra.gmra.mrb[0].mxu0 %v163_v37 }
 0x179   :  { %v403_v46 = vpop.f32.mrb[0].mxu0 }
 0x17a   :  { %v404_v47 = vadd.f32 %v403_v46, %v202_v44  ;;  %v405_v48 = vpop.f32.mrb[1].mxu0 }
 0x17b   :  { %v406_v50 = vadd.f32 %v405_v48, %v206_v45  ;;  %v407_v52 = vpop.f32.mrb[2].mxu0 }
 0x17c   :  { %v410_v53 = vmax.f32 %v404_v47, 0.0  ;;  %v408_v55 = vpop.f32.mrb[3].mxu0 }
 0x17d   :  { %v411_v56 = vmax.f32 %v406_v50, 0.0 }
 0x17e   :  { %v412_v58 = vpack.c.bf16 %v410_v53, %v410_v53 }
 0x17f   :  { %v413_v57 = vpack.c.bf16 %v411_v56, %v411_v56 }
 0x181   :  { %581 = vmatprep.mubr.bf16.mxu1 %v413_v57 }
 0x182   :  { %582 = vmatmul.mubr.bf16.vlgmr.msra.gmra.mrb[0].mxu1 %v412_v58 }
 0x255   :  { %v671_v59 = vpop.f32.mrb[0].mxu1 }
 0x256   :  { %v672_v51 = vpop.f32.mrb[1].mxu1 }
 0x257   :  { %v673_v61 = vadd.f32 %v672_v51, %v671_v59  ;;  %v674_v54 = vpop.f32.mrb[2].mxu1 }
 0x258   :  { %v675_v62 = vpop.f32.mrb[3].mxu1 }
 0x259   :  { %v584_v63 = vadd.f32 %v673_v61, %v638_v60 }
 0x25b   :  { %v589_v0 = vmax.f32 %v584_v63, -20.0 }
 0x25d   :  { %v590_v1 = vmin.f32 %v589_v0, 2.0 }
 0x25f   :  { %v591_v2 = vmul.f32 1.442695, %v590_v1 }
 0x261   :  { %753 = vpow2.f32 %v591_v2 }
 0x26b   :  { %v754_v4 = vpop.eup %753 }
 0x26c   :  { %v597_v5 = vsel %vm596_vm0, %v754_v4, 0.0 }
 0x26d   :  { %v598_v6 = vsel %vm595_vm1, %v584_v63, %v597_v5 }
 0x26e   :  { %600 = vst.msk [vmem:[%s927_s7] sm:$0xff] %vm599_vm2, %v598_v6 }
 0x26f   :  { %605 = vsyncpa [#allocation3], 1 }

</bundles_post_ra>
